<compile_context>
chip_gen: v7x
topology: tpu7x:2x2x1
jax: 0.10.0
libtpu: 0.0.40
codegen_flags: <defaults>
</compile_context>

<pallas_src>
import jax
import jax.numpy as jnp
from jax import lax
from jax.experimental import pallas as pl
from jax.experimental.pallas import tpu as pltpu


# ---------------------------------------------------------------------------
# Kernel
# ---------------------------------------------------------------------------
def _make_l2norm_kernel(eps: float):
    eps_sq = eps * eps
    inv_eps = 1.0 / eps

    def kernel(x_ref, o_ref):
        # Works for both the 3-D tile (bB, C, tT) and the 4-D leading-axis-C
        # tile (bB, C, tS, 128): the channel reduction is always axis=1.
        xf = x_ref[...].astype(jnp.float32)
        sq = jnp.sum(xf * xf, axis=1, keepdims=True)          # f32 accumulation
        # F.normalize semantics: out = x / max(||x||, eps).  Fused into one
        # EUP op:  ||x|| > eps  <=>  sq > eps^2  (eps > 0).
        inv = jnp.where(sq > eps_sq, lax.rsqrt(sq), inv_eps)
        # NOTE: lanes of a partial last block hold padding; rsqrt of garbage is
        # harmless (no fp traps on TPU, masked on store) — do not reuse them.
        o_ref[...] = (xf * inv).astype(o_ref.dtype)

    return kernel


# ---------------------------------------------------------------------------
# Tiling heuristics
# ---------------------------------------------------------------------------
def _vmem_config():
    """(vmem_limit_bytes, per-tile byte budget), generation aware."""
    cap = 128 * 1024 * 1024
    try:
        info = pltpu.get_tpu_info()
        cap = int(getattr(info, "vmem_capacity_bytes", cap)) or cap
    except Exception:
        pass
    if cap >= 96 * 1024 * 1024:
        # v5e / v6e: 128 MiB physical VMEM.  Footprint per step is
        # ~4 * tile bytes (in + out, each double-buffered) -> ~20 MiB.
        return 64 * 1024 * 1024, 5 * 1024 * 1024
    # v7x: 64 MiB physical VMEM -> footprint target ~14 MiB, leave headroom.
    return 44 * 1024 * 1024, (3 * 1024 + 512) * 1024


def _pick_blocks(B, N, elems_per_n, quantum, itemsize, tile_bytes):
    """Choose (bB, tN): batch block and block along an axis of extent N.

    elems_per_n: array elements per batch per unit of N (C for the lane-axis
                 layout, C*128 for the leading-axis-C layout).
    quantum:     hardware granularity along N (128 = lane axis, 8 = sublanes).
    """
    budget_elems = max(tile_bytes // max(itemsize, 1), quantum)

    # Biggest block along N that fits the budget (no artificial cap).
    if N <= quantum:
        tN = N                                    # full-extent block is legal
    else:
        max_n = budget_elems // max(elems_per_n, 1)
        tN = min(N, max(quantum, (max_n // quantum) * quantum))

    # Batch blocking: merge batches per step when one (…, N) slab is small,
    # amortizing the ~0.35 us/step overhead and coalescing DMAs.
    bB = 1
    if tN >= N:
        per_batch = elems_per_n * N
        if per_batch * itemsize <= 2 * 1024 * 1024:
            bB = int(max(1, min(B, budget_elems // max(per_batch, 1))))

    # Keep enough grid steps for pipelining and v7x's two TensorCores.
    def n_steps(b, t):
        return pl.cdiv(B, b) * pl.cdiv(N, t)

    max_steps = B * pl.cdiv(N, N if N <= quantum else quantum)
    min_steps = min(8, max_steps)
    while bB > 1 and n_steps(bB, tN) < min_steps:
        bB = max(1, bB // 2)
    while tN > quantum and n_steps(bB, tN) < min_steps:
        tN = max(quantum, ((tN // 2) // quantum) * quantum)
    return bB, tN


# ---------------------------------------------------------------------------
# Wrapper
# ---------------------------------------------------------------------------
def l2_norm(x: jax.Array, eps: float = 1e-12) -> jax.Array:
    """L2-normalize x over axis 1 (channels). x: (B, C, T)."""
    B, C, T = x.shape
    itemsize = jnp.dtype(x.dtype).itemsize
    vmem_limit, tile_bytes = _vmem_config()
    kernel = _make_l2norm_kernel(float(eps))

    cost = pl.CostEstimate(
        flops=3 * B * C * T,                 # square + reduce-add + scale
        transcendentals=B * T,               # one rsqrt per output column
        bytes_accessed=2 * B * C * T * itemsize,
    )
    cparams = pltpu.CompilerParams(
        dimension_semantics=("parallel", "parallel"),
        vmem_limit_bytes=vmem_limit,
    )

    # Leading-axis-C layout for small / sublane-unaligned channel counts.
    sublane_pack = max(8 * (4 // max(itemsize, 1)), 8)   # 8 f32, 16 bf16, 32 i8
    use_cfirst = (T >= 128) and (T % 128 == 0) and \
                 (C < sublane_pack or C % sublane_pack != 0)

    if use_cfirst:
        S = T // 128
        bB, tS = _pick_blocks(B, S, C * 128, 8, itemsize, tile_bytes)
        x4 = x.reshape(B, C, S, 128)                      # contiguous, free
        out4 = pl.pallas_call(
            kernel,
            out_shape=jax.ShapeDtypeStruct((B, C, S, 128), x.dtype),
            grid_spec=pltpu.PrefetchScalarGridSpec(
                num_scalar_prefetch=0,
                grid=(pl.cdiv(B, bB), pl.cdiv(S, tS)),
                in_specs=[pl.BlockSpec((bB, C, tS, 128),
                                       lambda b, t: (b, 0, t, 0))],
                out_specs=pl.BlockSpec((bB, C, tS, 128),
                                       lambda b, t: (b, 0, t, 0)),
            ),
            compiler_params=cparams,
            cost_estimate=cost,
        )(x4)
        return out4.reshape(B, C, T)

    bB, tT = _pick_blocks(B, T, C, 128, itemsize, tile_bytes)
    return pl.pallas_call(
        kernel,
        out_shape=jax.ShapeDtypeStruct((B, C, T), x.dtype),
        grid_spec=pltpu.PrefetchScalarGridSpec(
            num_scalar_prefetch=0,
            grid=(pl.cdiv(B, bB), pl.cdiv(T, tT)),
            in_specs=[pl.BlockSpec((bB, C, tT), lambda b, t: (b, 0, t))],
            out_specs=pl.BlockSpec((bB, C, tT), lambda b, t: (b, 0, t)),
        ),
        compiler_params=cparams,
        cost_estimate=cost,
    )(x)


# ---------------------------------------------------------------------------
# Reference + self-test
# ---------------------------------------------------------------------------
def _ref_l2_norm(x, eps=1e-12):
    # Matches torch.nn.functional.normalize(p=2, dim=1, eps) semantics.
    xf = x.astype(jnp.float32)
    norm = jnp.sqrt(jnp.sum(xf * xf, axis=1, keepdims=True))
    return (xf / jnp.maximum(norm, eps)).astype(x.dtype)


def _check(x, atol, rtol, tag):
    out = jax.block_until_ready(l2_norm(x, eps=1e-12))
    ref = _ref_l2_norm(x, eps=1e-12)
    assert out.shape == x.shape and out.dtype == x.dtype, tag
    ok = jnp.allclose(out.astype(jnp.float32), ref.astype(jnp.float32),
                      atol=atol, rtol=rtol)
    assert bool(ok), f"mismatch vs reference ({tag})"


if __name__ == "__main__":
    key = jax.random.PRNGKey(0)
    k1, k2, k3, k4, k5 = jax.random.split(key, 5)

    # 1) Small module-consistent shape (B, C, T); T <= 128 path.
    _check(jax.random.normal(k1, (2, 4, 16), dtype=jnp.float32),
           1e-5, 1e-5, "small")

    # 2) Tiled-T path with a partial last lane block (grid (2, 2), tT=128).
    _check(jax.random.normal(k2, (2, 6, 200), dtype=jnp.float32),
           1e-5, 1e-5, "tiled-partial")

    # 3) Leading-axis-C layout (C=4 < 8, T multiple of 128).
    _check(jax.random.normal(k3, (2, 4, 512), dtype=jnp.float32),
           1e-5, 1e-5, "c-first")

    # 4) Batch-blocked path (bB > 1) for many small batches.
    _check(jax.random.normal(k4, (16, 4, 16), dtype=jnp.float32),
           1e-5, 1e-5, "batch-blocked")

    # 5) bf16 input: f32 accumulation + f32 multiply, single cast on store.
    _check(jax.random.normal(k5, (2, 4, 16), dtype=jnp.float32).astype(jnp.bfloat16),
           2e-2, 2e-2, "bf16")

    print("KERNEL_OK")
</pallas_src>

<mosaic_0001>
module attributes {stable_mosaic.version = 11 : i64} {
  func.func @kernel(%arg0: i32, %arg1: i32, %arg2: memref<1x4x16xf32, #tpu.memory_space<vmem>>, %arg3: memref<1x4x16xf32, #tpu.memory_space<vmem>>) attributes {dimension_semantics = [#tpu.dimension_semantics<parallel>, #tpu.dimension_semantics<parallel>], iteration_bounds = array<i64: 2, 1>, scalar_prefetch = 0 : i64, scratch_operands = 0 : i64, tpu.core_type = #tpu.core_type<tc>, window_params = [{transform_indices = @transform_0, window_bounds = array<i64: 1, 4, 16>}, {transform_indices = @transform_1, window_bounds = array<i64: 1, 4, 16>}]} {
    %c0 = arith.constant 0 : index
    %c0_0 = arith.constant 0 : index
    %c0_1 = arith.constant 0 : index
    %0 = vector.load %arg2[%c0, %c0_0, %c0_1] : memref<1x4x16xf32, #tpu.memory_space<vmem>>, vector<1x4x16xf32>
    %1 = arith.mulf %0, %0 : vector<1x4x16xf32>
    %cst = arith.constant dense<0.000000e+00> : vector<1x16xf32>
    %2 = vector.multi_reduction <add>, %1, %cst [1] : vector<1x4x16xf32> to vector<1x16xf32>
    %3 = vector.shape_cast %2 : vector<1x16xf32> to vector<1x1x16xf32>
    %cst_2 = arith.constant 1.000000e-24 : f32
    %4 = vector.broadcast %cst_2 : f32 to vector<1x1x16xf32>
    %5 = arith.cmpf ogt, %3, %4 : vector<1x1x16xf32>
    %6 = math.rsqrt %3 : vector<1x1x16xf32>
    %cst_3 = arith.constant 9.99999995E+11 : f32
    %7 = vector.broadcast %cst_3 : f32 to vector<1x1x16xf32>
    %8 = arith.select %5, %6, %7 : vector<1x1x16xi1>, vector<1x1x16xf32>
    %9 = vector.broadcast %8 : vector<1x1x16xf32> to vector<1x4x16xf32>
    %10 = arith.mulf %0, %9 : vector<1x4x16xf32>
    %c0_4 = arith.constant 0 : index
    %c0_5 = arith.constant 0 : index
    %c0_6 = arith.constant 0 : index
    %11 = vector.load %arg3[%c0_4, %c0_5, %c0_6] : memref<1x4x16xf32, #tpu.memory_space<vmem>>, vector<1x4x16xf32>
    tpu.vector_store %arg3[%c0_4, %c0_5, %c0_6], %10 {strides = array<i32>} : memref<1x4x16xf32, #tpu.memory_space<vmem>>, vector<1x4x16xf32>,
    return
  }
  func.func @transform_0(%arg0: i32, %arg1: i32) -> (i32, i32, i32) {
    %c0_i32 = arith.constant 0 : i32
    %c0_i32_0 = arith.constant 0 : i32
    return %arg0, %c0_i32, %arg1 : i32, i32, i32
  }
  func.func @transform_1(%arg0: i32, %arg1: i32) -> (i32, i32, i32) {
    %c0_i32 = arith.constant 0 : i32
    %c0_i32_0 = arith.constant 0 : i32
    return %arg0, %c0_i32, %arg1 : i32, i32, i32
  }
}

</mosaic_0001>

<bundles_post_ra>
// kernel: tpu_custom_call.1
= control target key start
LH: loop header
LB: loop body
LE: loop exit
PB: predicated region body
PF: predicated region fallthrough
CT: control target
= control target key end

     0   :  { %6 = vsyncpa [#allocation3], 0  ;;  %s636_s0 = inlined_call_operand.hbm [shape: f32[2,4,16], index: 0, kind: input, shape index: {}]   ;;  %s637_s1 = inlined_call_operand.hbm [shape: f32[2,4,16], index: 1, kind: output, shape index: {}]  }
   0x1   :  { %8 = vsyncpa [#allocation3 + $0x1], 0 }
   0x2   :  { %9 = vsyncpa [#allocation4], 0 }
   0x3   :  { %11 = vsyncpa [#allocation4 + $0x1], 0  ;;  %s462_s6 = smov 0   ;;  %s464_s7 = smov 0  }
   0x4   :  { %s466_s8 = smov 0   ;;  %s468_s9 = smov 0  }
   0x5   :  { %s470_s10 = smov 0   ;;  %s472_s11 = smov 0  }
   0x6 LB: > { %s259_s12 = sadd.s32 4294967295, %s448_s11   ;;  %s260_s13 = sadd.s32 4294967294, %s448_s11   ;;  %s448_s11 = sphi %s472_s11, %s17_s11   ;;  %s444_s10 = sphi %s470_s10, %s653_s10   ;;  %s440_s9 = sphi %s468_s9, %s652_s9   ;;  %s436_s8 = sphi %s466_s8, %s651_s8   ;;  %s432_s7 = sphi %s464_s7, %s650_s7   ;;  %s428_s6 = sphi %s462_s6, %s649_s6  }
   0x7   : > { %s29_s14 = sadd.s32 1, %s444_s10  ;;  %s38_s15 = sadd.s32 1, %s436_s8 }
   0x8   : > { %p31_p0 = scmp.ge.s32.totalorder %s29_s14, 2  ;;  %p45_p1 = scmp.ne.s32.totalorder %s436_s8, %s432_s7 }
   0x9   : > { %p46_p2 = scmp.eq.s32.totalorder %s448_s11, 0  ;;  %p51_p3 = scmp.ne.s32.totalorder %s432_s7, %s428_s6 }
   0xa   : > { %s655_s14 = smov (%p31_p0, %s29_s14), 0  ;;  %p52_p5 = scmp.eq.s32.totalorder %s259_s12, 0 }
   0xb   : > { %p503_p4 = por %p46_p2, %p45_p1  ;;  %s33_s17 = ssub.s32 %s444_s10, %s655_s14 }
   0xc   : > { %p77_p6 = scmp.eq.s32.totalorder %s259_s12, 1  ;;  %p36_p7 = scmp.eq.s32.totalorder %s33_s17, 0 }
   0xd   : > { %p509_p8 = por %p52_p5, %p51_p3  ;;  %p83_p10 = scmp.eq.s32.totalorder %s260_s13, 1 }
   0xe   : > { %p513_p9 = por %p77_p6, %p45_p1  ;;  %p284_p13 = scmp.lt.s32.totalorder %s448_s11, 2 }
   0xf   : > { %s518_s20 = scalar_select %p36_p7, %s436_s8, %s38_s15  }
  0x10   : > { %s641_s19 = scalar_select %p513_p9, 1, 0 }
  0x11   : > { %p520_p11 = por %p83_p10, %p51_p3  ;;  %s103_s22 = sand.u32 1, %s436_s8  }
  0x12   : > { %s263_s23 = sshll.u32 %s103_s22, 2  ;;  %s264_s24 = sshll.u32 %s444_s10, 6 }
  0x13   : > { %s642_s21 = scalar_select %p520_p11, 1, 0 }
  0x14   : > { %s531_s27 = scalar_lea.hbm %s636_s0, %s264_s24  ;;  %s107_s28 = scalar_lea.vmem [#allocation2], %s263_s23 }
  0x15   : > { %s115_s29 = sshll.u32 %s107_s28, 4  ;;  %p537_p0 = pnand %p284_p13, %p503_p4  ;;  %s533_s29 = int_to_ptr.vmem [resolvable:$true] %s115_s29 }
  0x16   : > { %s104_s2 = scalar_lea.sflag [#allocation3], %s103_s22  ;;  %s336_s3 = scalar_lea.hbm %s531_s27, 64 }
  0x17   : > { %p337_p3 = scmp.ne.s32.totalorder %s531_s27, %s336_s3  ;;  %p338_p5 = pneg %p537_p0 }
  0x18   : > { %s341_s12 = scalar_lea.hbm %s636_s0, 128  ;;  %p342_p4 = scmp.lt.u32.totalorder %s531_s27, %s636_s0 }
  0x19   : > { %p339_p6 = pnand %p338_p5, %p337_p3  ;;  %p343_p10 = scmp.lt.u32.totalorder %s341_s12, %s336_s3 }
  0x1a   : > { %p345_p12 = scmp.lt.u32.totalorder %s336_s3, %s531_s27 }
  0x1b   : > { %p340_p7 = pneg %p339_p6  ;;  %p344_p13 = por %p343_p10, %p342_p4 }
  0x1d   : > { %p346_p1 = por %p345_p12, %p344_p13 }
  0x1f   : > { %p347_p2 = pnand %p346_p1, %p340_p7 }
  0x21   : > { %350 = shalt.err (!%p347_p2)
}
  0x22   : > { %s351_s16 = scalar_lea.vmem %s533_s29, 64  ;;  %s450_s17 = smov [#allocation2]  }
  0x23   : > { %p352_p3 = scmp.ne.s32.totalorder %s533_s29, %s351_s16  ;;  %s356_s22 = sshll.u32 %s450_s17, 4  ;;  %s357_s22 = int_to_ptr.vmem [resolvable:$false] %s356_s22 }
  0x24   : > { %s358_s23 = scalar_lea.vmem %s357_s22, 128  ;;  %p359_p9 = scmp.lt.s32.totalorder %s533_s29, %s357_s22 }
  0x25   : > { %p354_p6 = pnand %p352_p3, %p338_p5  ;;  %p360_p4 = scmp.lt.s32.totalorder %s358_s23, %s351_s16 }
  0x27   : > { %p355_p11 = pneg %p354_p6  ;;  %p361_p10 = por %p360_p4, %p359_p9 }
  0x29   : > { %p362_p12 = pnand %p361_p10, %p355_p11 }
  0x2b   : > { %365 = shalt.err (!%p362_p12)
}
  0x2c   : > { %279 = dma.hbm_to_vmem [thread:$0]  (!%p537_p0), %s531_s27, 64, %s533_s29, %s104_s2  }
  0x2d   : > { %p644_p1 = scmp.lt.s32.totalorder %s448_s11, 3  ;;  %p645_p2 = scmp.ge.s32.totalorder %s448_s11, 1 }
  0x2f   : > { %p121_p5 = pnand %p645_p2, %p644_p1 }
  0x30   : > { %s573_s24 = sand.u32 (!%p121_p5), 1, %s432_s7  }
  0x31   : > { %124 = sbr.rel (%p121_p5) target bundleno = 101 (0x65), region = 24  ;;  %s266_s25 = sshll.u32 (!%p121_p5), %s573_s24, 2 }
  0x32   : > { %s127_s26 = scalar_lea.sflag (!%p121_p5), [#allocation3], %s573_s24  ;;  %s130_s28 = scalar_lea.vmem (!%p121_p5), [#allocation2], %s266_s25 }
  0x38   : > { %419 = dma.done.wait (%p509_p8), %s127_s26, 64  }
  0x39   : > { %421 = vsyncadd (%p509_p8), %s127_s26, 4294967232  ;;  %v149_v0 = vld [vmem:[%s130_s28] sm:$0xf]  ;;  %vm151_vm0 = vcmask 125952   ;;  %s148_s27 = scalar_lea.vmem [#allocation5], %s266_s25  ;;  %s269_s18 = sshll.u32 %s440_s9, 6 }
  0x3a   : > { %v150_v1 = vmul.f32 %v149_v0, %v149_v0  ;;  %s179_s29 = sshll.u32 %s148_s27, 4  ;;  %s588_s3 = scalar_lea.hbm %s637_s1, %s269_s18  ;;  %s583_s29 = int_to_ptr.vmem [resolvable:$true] %s179_s29 }
  0x3b   : > { %s165_s4 = scalar_lea.sflag [#allocation4], %s573_s24  ;;  %s366_s5 = scalar_lea.vmem %s583_s29, 64 }
  0x3c   : > { %v152_v2 = vsel %vm151_vm0, %v150_v1, 0.0  ;;  %p367_p8 = scmp.ne.s32.totalorder %s583_s29, %s366_s5  ;;  %p646_p9 = scmp.ne.s32.totalorder %s641_s19, 0 }
  0x3d   : > { %v153_v3 = vrot.slane %v152_v2, 4  ;;  %s451_s9 = smov [#allocation5]  }
  0x3e   : > { %p368_p11 = pnand %p367_p8, %p646_p9  ;;  %s370_s12 = sshll.u32 %s451_s9, 4  ;;  %s371_s12 = int_to_ptr.vmem [resolvable:$false] %s370_s12 }
  0x3f   : > { %v154_v4 = vadd.f32 %v153_v3, %v152_v2  ;;  %s372_s13 = scalar_lea.vmem %s371_s12, 128  ;;  %p373_p7 = scmp.lt.s32.totalorder %s583_s29, %s371_s12 }
  0x40   : > { %p369_p0 = pneg %p368_p11  ;;  %p374_p13 = scmp.lt.s32.totalorder %s372_s13, %s366_s5 }
  0x41   : > { %v155_v5 = vrot.slane %v154_v4, 2 }
  0x42   : > { %p375_p3 = por %p374_p13, %p373_p7 }
  0x43   : > { %v156_v6 = vadd.f32 %v155_v5, %v154_v4 }
  0x44   : > { %p376_p6 = pnand %p375_p3, %p369_p0 }
  0x45   : > { %v157_v7 = vrot.slane %v156_v6, 1 }
  0x47   : > { %v158_v8 = vadd.f32 %v157_v7, %v156_v6 }
  0x49   : > { %334 = vrsqrt.f32 %v158_v8  ;;  %vm159_vm1 = vcmp.gt.f32.partialorder %v158_v8, 1e-24 }
  0x53   : > { %v335_v9 = vpop.eup %334 }
  0x54   : > { %v161_v10 = vsel %vm159_vm1, %v335_v9, 1e+12 }
  0x55   : > { %v162_v11 = vmul.f32 %v161_v10, %v149_v0 }
  0x57   : > { %163 = vst.msk [vmem:[%s148_s27] sm:$0xf] %vm151_vm0, %v162_v11 }
  0x58   : > { %379 = shalt.err (!%p376_p6)
}
  0x59   : > { %s380_s15 = scalar_lea.hbm %s588_s3, 64  ;;  %s384_s22 = scalar_lea.hbm %s637_s1, 128 }
  0x5a   : > { %p381_p4 = scmp.ne.s32.totalorder %s588_s3, %s380_s15  ;;  %p385_p1 = scmp.lt.u32.totalorder %s588_s3, %s637_s1 }
  0x5b   : > { %p386_p2 = scmp.lt.u32.totalorder %s384_s22, %s380_s15  ;;  %p388_p8 = scmp.lt.u32.totalorder %s380_s15, %s588_s3 }
  0x5c   : > { %p382_p10 = pnand %p381_p4, %p646_p9 }
  0x5d   : > { %p387_p5 = por %p386_p2, %p385_p1 }
  0x5e   : > { %p383_p12 = pneg %p382_p10 }
  0x5f   : > { %p389_p11 = por %p388_p8, %p387_p5 }
  0x61   : > { %p390_p0 = pnand %p389_p11, %p383_p12 }
  0x63   : > { %393 = shalt.err (!%p390_p0)
}
  0x64   : > { %274 = dma.vmem_to_hbm [thread:$0]  (%p646_p9), %s583_s29, 64, %s588_s3, %s165_s4  }
  0x65 PF: > { %s191_s25 = sand.u32 1, %s428_s6   ;;  %p647_p7 = scmp.ne.s32.totalorder %s642_s21, 0 }
  0x66   : > { %p648_p13 = scmp.ge.s32.totalorder %s448_s11, 2  ;;  %s192_s26 = scalar_lea.sflag [#allocation4], %s191_s25 }
  0x68   : > { %p281_p3 = pnand %p648_p13, %p647_p7 }
  0x6a   : > { %423 = dma.done.wait (!%p281_p3), %s192_s26, 64  }
  0x6b   : > { %425 = vsyncadd (!%p281_p3), %s192_s26, 4294967232  ;;  %s17_s11 = sadd.s32 1, %s448_s11   ;;  %s649_s6 = smov %s432_s7 }
  0x6c   : > { %p14_p6 = scmp.ge.s32.totalorder %s17_s11, 4   ;;  %s650_s7 = smov %s436_s8 }
  0x6d   : > { %s651_s8 = smov %s518_s20  ;;  %s652_s9 = smov %s444_s10 }
  0x6e   : > { %s653_s10 = smov %s655_s14  ;;  %16 = sbr.rel (!%p14_p6) target bundleno = 6 (0x6), region = 69 }
  0x75   :  { %197 = vsyncpa [#allocation3], 1 }
  0x76   :  { %199 = vsyncpa [#allocation3 + $0x1], 1 }
  0x77   :  { %200 = vsyncpa [#allocation4], 1 }
  0x78   :  { %202 = vsyncpa [#allocation4 + $0x1], 1 }

</bundles_post_ra>
